<compile_context>
chip_gen: v7x
topology: tpu7x:2x2x1
jax: 0.10.0
libtpu: 0.0.40
codegen_flags: <defaults>
</compile_context>

<pallas_src>
import jax
import jax.numpy as jnp
from jax.experimental import pallas as pl
from jax.experimental.pallas import tpu as pltpu

NUM_NODE_FEATURES = 5  # vocabulary size (V) of the embedding table


def _embed_kernel(idx_ref, w_ref, out_ref):
    # idx_ref : (TILE_N, K)    int32   node-type indices for this row tile
    # w_ref   : (V, E)         float32 embedding table (full, resident in VMEM)
    # out_ref : (TILE_N, K*E)  float32 fused output slab
    idx = idx_ref[...]
    w = w_ref[...]
    tile_n, k = idx.shape
    v, e = w.shape

    cols = []
    for j in range(k):
        # Narrow (TILE_N, 1) mask compares; table rows stay (1, E) and are
        # broadcast by the select itself (no materialized (TILE_N, E) rows).
        idx_col = idx[:, j:j + 1]                                   # (TILE_N, 1)
        if v == 1:
            acc = jnp.broadcast_to(w[0:1, :], (tile_n, e))
        else:
            acc = jnp.where(idx_col == 1, w[1:2, :], w[0:1, :])     # (TILE_N, E)
            for vv in range(2, v):
                acc = jnp.where(idx_col == vv, w[vv:vv + 1, :], acc)
        cols.append(acc)

    # Single lane-dense store of the fused tile (one wide vst per grid step
    # instead of K E-wide masked stores).
    fused = cols[0] if k == 1 else jnp.concatenate(cols, axis=-1)
    out_ref[...] = fused


def _choose_tile_n(n, k, e):
    """Row-tile size from an explicit VMEM budget.

    Budget counts:
      * output tile (K*E f32 lanes), double buffered,
      * the int32 index block, whose minor dim lane-pads to 128, double buffered,
      * ~1x output-width of elementwise temporaries (per-column accs + concat).
    Target ~24 MiB working set — fits every generation once vmem_limit_bytes
    is raised (v5e default scoped VMEM is only 16 MiB; v7x physical is 64 MiB).
    """
    out_row_bytes = k * e * 4
    idx_row_bytes = 128 * pl.cdiv(k, 128) * 4   # lane-padded int32 index rows
    per_row_bytes = 2 * out_row_bytes + 2 * idx_row_bytes + 2 * out_row_bytes
    budget = 24 << 20
    target_rows = max(8, budget // max(per_row_bytes, 1))
    if n <= target_rows:
        return n                       # single full-extent block: always legal
    return max(8, (target_rows // 8) * 8)


def node_encoder_forward(x, emb_weight):
    """x: integer indices (N, K); emb_weight: (V, E) float32.

    Returns (N, K*E) float32, matching PyTorch NodeEncoder.forward.
    """
    n, k = x.shape
    v, e = emb_weight.shape
    out_cols = k * e
    idx = x.astype(jnp.int32)

    tile_n = _choose_tile_n(n, k, e)
    grid = (pl.cdiv(n, tile_n),)

    # Bandwidth-bound, ~zero flops: tell XLA's scheduler so it can overlap.
    cost = pl.CostEstimate(
        flops=0,
        transcendentals=0,
        bytes_accessed=n * k * 4 + v * e * 4 + n * out_cols * 4,
    )

    out = pl.pallas_call(
        _embed_kernel,
        out_shape=jax.ShapeDtypeStruct((n, out_cols), jnp.float32),
        grid=grid,
        in_specs=[
            pl.BlockSpec((tile_n, k), lambda i: (i, 0)),   # row tile of indices
            pl.BlockSpec((v, e), lambda i: (0, 0)),        # table: same block every step
        ],
        out_specs=pl.BlockSpec((tile_n, out_cols), lambda i: (i, 0)),
        compiler_params=pltpu.CompilerParams(
            dimension_semantics=("parallel",),             # rows are independent
            vmem_limit_bytes=40 << 20,                     # cover tile budget on all gens
        ),
        cost_estimate=cost,
    )(idx, emb_weight)
    return out


def init_node_encoder_params(key, emb_dim):
    """Xavier-uniform init of the (num_node_features, emb_dim) embedding table."""
    fan_in, fan_out = NUM_NODE_FEATURES, emb_dim
    limit = (6.0 / (fan_in + fan_out)) ** 0.5
    return jax.random.uniform(
        key, (NUM_NODE_FEATURES, emb_dim), dtype=jnp.float32,
        minval=-limit, maxval=limit,
    )


if __name__ == "__main__":
    key = jax.random.PRNGKey(0)
    k_w, k_x = jax.random.split(key)

    emb_dim = 32
    num_nodes = 16
    feats_per_node = 2   # x has shape (N, 2) -> output (N, 2*emb_dim)

    emb_weight = init_node_encoder_params(k_w, emb_dim)
    x = jax.random.randint(
        k_x, (num_nodes, feats_per_node), 0, NUM_NODE_FEATURES, dtype=jnp.int32
    )

    out = node_encoder_forward(x, emb_weight)
    out = jax.block_until_ready(out)

    # reference check (plain JAX gather + flatten)
    ref = emb_weight[x].reshape(num_nodes, feats_per_node * emb_dim)
    assert out.shape == (num_nodes, feats_per_node * emb_dim)
    assert jnp.allclose(out, ref, atol=1e-6), "mismatch vs reference gather"

    print("KERNEL_OK")
</pallas_src>

<mosaic_0001>
module attributes {stable_mosaic.version = 11 : i64} {
  func.func @_embed_kernel(%arg0: i32, %arg1: memref<16x2xi32, #tpu.memory_space<vmem>>, %arg2: memref<5x32xf32, #tpu.memory_space<vmem>>, %arg3: memref<16x64xf32, #tpu.memory_space<vmem>>) attributes {dimension_semantics = [#tpu.dimension_semantics<parallel>], iteration_bounds = array<i64: 1>, scalar_prefetch = 0 : i64, scratch_operands = 0 : i64, tpu.core_type = #tpu.core_type<tc>, window_params = [{transform_indices = @transform_0, window_bounds = array<i64: 16, 2>}, {pipeline_mode = #tpu.pipeline_mode<synchronous>, transform_indices = @transform_1, window_bounds = array<i64: 5, 32>}, {transform_indices = @transform_2, window_bounds = array<i64: 16, 64>}]} {
    %c0 = arith.constant 0 : index
    %c0_0 = arith.constant 0 : index
    %0 = vector.load %arg1[%c0, %c0_0] : memref<16x2xi32, #tpu.memory_space<vmem>>, vector<16x2xi32>
    %c0_1 = arith.constant 0 : index
    %c0_2 = arith.constant 0 : index
    %1 = vector.load %arg2[%c0_1, %c0_2] : memref<5x32xf32, #tpu.memory_space<vmem>>, vector<5x32xf32>
    %2 = vector.extract_strided_slice %0 {offsets = [0, 0], sizes = [16, 1], strides = [1, 1]} : vector<16x2xi32> to vector<16x1xi32>
    %c1_i32 = arith.constant 1 : i32
    %3 = vector.broadcast %c1_i32 : i32 to vector<16x1xi32>
    %4 = arith.cmpi eq, %2, %3 : vector<16x1xi32>
    %5 = vector.extract_strided_slice %1 {offsets = [1, 0], sizes = [1, 32], strides = [1, 1]} : vector<5x32xf32> to vector<1x32xf32>
    %6 = vector.extract_strided_slice %1 {offsets = [0, 0], sizes = [1, 32], strides = [1, 1]} : vector<5x32xf32> to vector<1x32xf32>
    %7 = vector.shape_cast %4 : vector<16x1xi1> to vector<16x1xi1>
    %8 = vector.broadcast %7 : vector<16x1xi1> to vector<16x32xi1>
    %9 = vector.shape_cast %5 : vector<1x32xf32> to vector<1x32xf32>
    %10 = vector.broadcast %9 : vector<1x32xf32> to vector<16x32xf32>
    %11 = vector.shape_cast %6 : vector<1x32xf32> to vector<1x32xf32>
    %12 = vector.broadcast %11 : vector<1x32xf32> to vector<16x32xf32>
    %13 = arith.select %8, %10, %12 : vector<16x32xi1>, vector<16x32xf32>
    %c2_i32 = arith.constant 2 : i32
    %14 = vector.broadcast %c2_i32 : i32 to vector<16x1xi32>
    %15 = arith.cmpi eq, %2, %14 : vector<16x1xi32>
    %16 = vector.extract_strided_slice %1 {offsets = [2, 0], sizes = [1, 32], strides = [1, 1]} : vector<5x32xf32> to vector<1x32xf32>
    %17 = vector.shape_cast %15 : vector<16x1xi1> to vector<16x1xi1>
    %18 = vector.broadcast %17 : vector<16x1xi1> to vector<16x32xi1>
    %19 = vector.shape_cast %16 : vector<1x32xf32> to vector<1x32xf32>
    %20 = vector.broadcast %19 : vector<1x32xf32> to vector<16x32xf32>
    %21 = arith.select %18, %20, %13 : vector<16x32xi1>, vector<16x32xf32>
    %c3_i32 = arith.constant 3 : i32
    %22 = vector.broadcast %c3_i32 : i32 to vector<16x1xi32>
    %23 = arith.cmpi eq, %2, %22 : vector<16x1xi32>
    %24 = vector.extract_strided_slice %1 {offsets = [3, 0], sizes = [1, 32], strides = [1, 1]} : vector<5x32xf32> to vector<1x32xf32>
    %25 = vector.shape_cast %23 : vector<16x1xi1> to vector<16x1xi1>
    %26 = vector.broadcast %25 : vector<16x1xi1> to vector<16x32xi1>
    %27 = vector.shape_cast %24 : vector<1x32xf32> to vector<1x32xf32>
    %28 = vector.broadcast %27 : vector<1x32xf32> to vector<16x32xf32>
    %29 = arith.select %26, %28, %21 : vector<16x32xi1>, vector<16x32xf32>
    %c4_i32 = arith.constant 4 : i32
    %30 = vector.broadcast %c4_i32 : i32 to vector<16x1xi32>
    %31 = arith.cmpi eq, %2, %30 : vector<16x1xi32>
    %32 = vector.extract_strided_slice %1 {offsets = [4, 0], sizes = [1, 32], strides = [1, 1]} : vector<5x32xf32> to vector<1x32xf32>
    %33 = vector.shape_cast %31 : vector<16x1xi1> to vector<16x1xi1>
    %34 = vector.broadcast %33 : vector<16x1xi1> to vector<16x32xi1>
    %35 = vector.shape_cast %32 : vector<1x32xf32> to vector<1x32xf32>
    %36 = vector.broadcast %35 : vector<1x32xf32> to vector<16x32xf32>
    %37 = arith.select %34, %36, %29 : vector<16x32xi1>, vector<16x32xf32>
    %38 = vector.extract_strided_slice %0 {offsets = [0, 1], sizes = [16, 1], strides = [1, 1]} : vector<16x2xi32> to vector<16x1xi32>
    %c1_i32_3 = arith.constant 1 : i32
    %39 = vector.broadcast %c1_i32_3 : i32 to vector<16x1xi32>
    %40 = arith.cmpi eq, %38, %39 : vector<16x1xi32>
    %41 = vector.extract_strided_slice %1 {offsets = [1, 0], sizes = [1, 32], strides = [1, 1]} : vector<5x32xf32> to vector<1x32xf32>
    %42 = vector.extract_strided_slice %1 {offsets = [0, 0], sizes = [1, 32], strides = [1, 1]} : vector<5x32xf32> to vector<1x32xf32>
    %43 = vector.shape_cast %40 : vector<16x1xi1> to vector<16x1xi1>
    %44 = vector.broadcast %43 : vector<16x1xi1> to vector<16x32xi1>
    %45 = vector.shape_cast %41 : vector<1x32xf32> to vector<1x32xf32>
    %46 = vector.broadcast %45 : vector<1x32xf32> to vector<16x32xf32>
    %47 = vector.shape_cast %42 : vector<1x32xf32> to vector<1x32xf32>
    %48 = vector.broadcast %47 : vector<1x32xf32> to vector<16x32xf32>
    %49 = arith.select %44, %46, %48 : vector<16x32xi1>, vector<16x32xf32>
    %c2_i32_4 = arith.constant 2 : i32
    %50 = vector.broadcast %c2_i32_4 : i32 to vector<16x1xi32>
    %51 = arith.cmpi eq, %38, %50 : vector<16x1xi32>
    %52 = vector.extract_strided_slice %1 {offsets = [2, 0], sizes = [1, 32], strides = [1, 1]} : vector<5x32xf32> to vector<1x32xf32>
    %53 = vector.shape_cast %51 : vector<16x1xi1> to vector<16x1xi1>
    %54 = vector.broadcast %53 : vector<16x1xi1> to vector<16x32xi1>
    %55 = vector.shape_cast %52 : vector<1x32xf32> to vector<1x32xf32>
    %56 = vector.broadcast %55 : vector<1x32xf32> to vector<16x32xf32>
    %57 = arith.select %54, %56, %49 : vector<16x32xi1>, vector<16x32xf32>
    %c3_i32_5 = arith.constant 3 : i32
    %58 = vector.broadcast %c3_i32_5 : i32 to vector<16x1xi32>
    %59 = arith.cmpi eq, %38, %58 : vector<16x1xi32>
    %60 = vector.extract_strided_slice %1 {offsets = [3, 0], sizes = [1, 32], strides = [1, 1]} : vector<5x32xf32> to vector<1x32xf32>
    %61 = vector.shape_cast %59 : vector<16x1xi1> to vector<16x1xi1>
    %62 = vector.broadcast %61 : vector<16x1xi1> to vector<16x32xi1>
    %63 = vector.shape_cast %60 : vector<1x32xf32> to vector<1x32xf32>
    %64 = vector.broadcast %63 : vector<1x32xf32> to vector<16x32xf32>
    %65 = arith.select %62, %64, %57 : vector<16x32xi1>, vector<16x32xf32>
    %c4_i32_6 = arith.constant 4 : i32
    %66 = vector.broadcast %c4_i32_6 : i32 to vector<16x1xi32>
    %67 = arith.cmpi eq, %38, %66 : vector<16x1xi32>
    %68 = vector.extract_strided_slice %1 {offsets = [4, 0], sizes = [1, 32], strides = [1, 1]} : vector<5x32xf32> to vector<1x32xf32>
    %69 = vector.shape_cast %67 : vector<16x1xi1> to vector<16x1xi1>
    %70 = vector.broadcast %69 : vector<16x1xi1> to vector<16x32xi1>
    %71 = vector.shape_cast %68 : vector<1x32xf32> to vector<1x32xf32>
    %72 = vector.broadcast %71 : vector<1x32xf32> to vector<16x32xf32>
    %73 = arith.select %70, %72, %65 : vector<16x32xi1>, vector<16x32xf32>
    %74 = tpu.concatenate %37, %73 in 1 : vector<16x32xf32>, vector<16x32xf32> -> vector<16x64xf32>
    %c0_7 = arith.constant 0 : index
    %c0_8 = arith.constant 0 : index
    %75 = vector.load %arg3[%c0_7, %c0_8] : memref<16x64xf32, #tpu.memory_space<vmem>>, vector<16x64xf32>
    tpu.vector_store %arg3[%c0_7, %c0_8], %74 {strides = array<i32>} : memref<16x64xf32, #tpu.memory_space<vmem>>, vector<16x64xf32>,
    return
  }
  func.func @transform_0(%arg0: i32) -> (i32, i32) {
    %c0_i32 = arith.constant 0 : i32
    %c0_i32_0 = arith.constant 0 : i32
    return %arg0, %c0_i32 : i32, i32
  }
  func.func @transform_1(%arg0: i32) -> (i32, i32) {
    %c0_i32 = arith.constant 0 : i32
    %c0_i32_0 = arith.constant 0 : i32
    %c0_i32_1 = arith.constant 0 : i32
    return %c0_i32, %c0_i32_0 : i32, i32
  }
  func.func @transform_2(%arg0: i32) -> (i32, i32) {
    %c0_i32 = arith.constant 0 : i32
    %c0_i32_0 = arith.constant 0 : i32
    return %arg0, %c0_i32 : i32, i32
  }
}

</mosaic_0001>

<bundles_post_ra>
// kernel: tpu_custom_call.1
= control target key start
LH: loop header
LB: loop body
LE: loop exit
PB: predicated region body
PF: predicated region fallthrough
CT: control target
= control target key end

     0   :  { %s238_s0 = inlined_call_operand.vmem [shape: s32[16,2], index: 0, kind: input, shape index: {}]   ;;  %s239_s1 = inlined_call_operand.vmem [shape: f32[5,32], index: 1, kind: input, shape index: {}]   ;;  %s240_s2 = inlined_call_operand.hbm [shape: f32[16,64], index: 2, kind: output, shape index: {}]  }
   0x1   :  { %v12_v0 = vld [vmem:[%s238_s0] sm:$0xff]  ;;  %v13_v1 = vld [vmem:[%s238_s0 + $0x8] sm:$0xff] }
   0x2   :  { %7 = vsyncpa [#allocation3], 0  ;;  %v196_v2 = vmov 1   ;;  %vm37_vm0 = vcmp.eq.s32.totalorder %v12_v0, 2  ;;  %vm15_vm1 = vcmp.eq.s32.totalorder %v12_v0, 1  ;;  %vm38_vm2 = vcmp.eq.s32.totalorder %v13_v1, 2 }
   0x3   :  { %168 = vset.pattern.permute.xlu1 %v196_v2  ;;  %167 = vset.pattern.permute.xlu0 %v196_v2  ;;  %vm16_vm3 = vcmp.eq.s32.totalorder %v13_v1, 1  ;;  %v197_v3 = vmov 0   ;;  %vm56_vm4 = vcmp.eq.s32.totalorder %v13_v1, 3  ;;  %vm55_vm5 = vcmp.eq.s32.totalorder %v12_v0, 3  ;;  %v14_v18 = vld [vmem:[%s239_s1] sm:$0x1f] }
   0x4   :  { %v39_v4 = vsel %vm37_vm0, 1, %v197_v3  ;;  %v17_v5 = vsel %vm15_vm1, 1, %v197_v3  ;;  %v40_v6 = vsel %vm38_vm2, 1, %v197_v3  ;;  %v18_v7 = vsel %vm16_vm3, 1, %v197_v3  ;;  %s198_s1 = smov 32   ;;  %s199_s14 = smov [#allocation2]  }
   0x5   :  { %102 = vperm.xlu1 %168, %v39_v4   ;;  %92 = vperm.xlu0 %167, %v17_v5   ;;  %v58_v8 = vsel %vm56_vm4, 1, %v197_v3  ;;  %v57_v9 = vsel %vm55_vm5, 1, %v197_v3  ;;  %vm74_vm6 = vcmp.eq.s32.totalorder %v13_v1, 4  ;;  %vm73_vm7 = vcmp.eq.s32.totalorder %v12_v0, 4  ;;  %s150_s15 = sshll.u32 %s199_s14, 4  ;;  %s151_s15 = int_to_ptr.vmem [resolvable:$true] %s150_s15 }
   0x6   :  { %v76_v10 = vsel %vm74_vm6, 1, %v197_v3  ;;  %v75_v11 = vsel %vm73_vm7, 1, %v197_v3  ;;  %v27_v12 = vlaneseq  ;;  %s172_s16 = scalar_lea.vmem %s151_s15, 256  ;;  %p177_p1 = scmp.lt.s32.totalorder %s151_s15, %s151_s15 }
   0x7   :  { %p173_p0 = scmp.ne.s32.totalorder %s151_s15, %s172_s16  ;;  %p178_p2 = scmp.lt.s32.totalorder %s172_s16, %s172_s16 }
   0x8   :  { %v28_v13 = vshrl.u32 %v27_v12, 7 }
   0x9   :  { %105 = vperm.xlu1 %168, %v40_v6   ;;  %95 = vperm.xlu0 %167, %v18_v7   ;;  %p179_p3 = por %p178_p2, %p177_p1 }
   0xa   :  { %v29_v16 = vsub.s32 1, %v28_v13  ;;  %v33_v17 = vsub.s32 0, %v28_v13  ;;  %v51_v21 = vsub.s32 2, %v28_v13  ;;  %v69_v22 = vsub.s32 3, %v28_v13 }
   0xb   :  { %v87_v25 = vsub.s32 4, %v28_v13  ;;  %p180_p4 = pnand %p179_p3, %p173_p0 }
   0xc   :  { %v30_v23 = vrot.slane %v14_v18, %v29_v16  ;;  %v34_v24 = vrot.slane %v14_v18, %v33_v17  ;;  %v52_v26 = vrot.slane %v14_v18, %v51_v21  ;;  %v70_v27 = vrot.slane %v14_v18, %v69_v22 }
   0xd   :  { %115 = vperm.xlu1 %168, %v58_v8   ;;  %112 = vperm.xlu0 %167, %v57_v9   ;;  %v88_v32 = vrot.slane %v14_v18, %v87_v25 }
  0x11   :  { %125 = vperm.xlu1 %168, %v76_v10   ;;  %122 = vperm.xlu0 %167, %v75_v11  }
  0x15   :  { %170 = vset.pattern.permute.xlu1 %v197_v3  ;;  %169 = vset.pattern.permute.xlu0 %v197_v3 }
  0x16   :  { %23 = vperm.xlu1 %170, %v18_v7   ;;  %20 = vperm.xlu0 %169, %v17_v5  }
  0x1a   :  { %42 = vperm.xlu1 %170, %v39_v4   ;;  %45 = vperm.xlu0 %169, %v40_v6  }
  0x1e   :  { %60 = vperm.xlu1 %170, %v57_v9   ;;  %63 = vperm.xlu0 %169, %v58_v8  }
  0x22   :  { %78 = vperm.xlu1 %170, %v75_v11   ;;  %81 = vperm.xlu0 %169, %v76_v10  }
  0x26   :  { %171 = vset.pattern.permute.xlu0 %v196_v2 }
  0x84   :  { %v103_v14 = vpop.permute.xlu1 %102  ;;  %v93_v15 = vpop.permute.xlu0 %92 }
  0x85   :  { %vm97_vm8 = vcmp.eq.s32.totalorder %v93_v15, 1  ;;  %vm107_vm10 = vcmp.eq.s32.totalorder %v103_v14, 1 }
  0x86   :  { %v99_v30 = vsel %vm97_vm8, %v30_v23, %v34_v24  ;;  %vm139_vm8 = vcmask 261120  }
  0x87   :  { %v109_v34 = vsel %vm107_vm10, %v52_v26, %v99_v30 }
  0x88   :  { %v106_v19 = vpop.permute.xlu1 %105  ;;  %v96_v20 = vpop.permute.xlu0 %95 }
  0x89   :  { %vm98_vm9 = vcmp.eq.s32.totalorder %v96_v20, 1  ;;  %vm108_vm11 = vcmp.eq.s32.totalorder %v106_v19, 1 }
  0x8a   :  { %v100_v31 = vsel %vm98_vm9, %v30_v23, %v34_v24  ;;  %vm142_vm9 = vcmask 523264  }
  0x8b   :  { %v110_v33 = vsel %vm108_vm11, %v52_v26, %v100_v31 }
  0x8c   :  { %v116_v28 = vpop.permute.xlu1 %115  ;;  %v113_v29 = vpop.permute.xlu0 %112 }
  0x8d   :  { %vm118_vm12 = vcmp.eq.s32.totalorder %v116_v28, 1  ;;  %vm117_vm13 = vcmp.eq.s32.totalorder %v113_v29, 1 }
  0x8e   :  { %v120_v37 = vsel %vm118_vm12, %v70_v27, %v110_v33  ;;  %v119_v38 = vsel %vm117_vm13, %v70_v27, %v109_v34 }
  0x90   :  { %v126_v35 = vpop.permute.xlu1 %125  ;;  %v123_v36 = vpop.permute.xlu0 %122 }
  0x91   :  { %vm128_vm14 = vcmp.eq.s32.totalorder %v126_v35, 1  ;;  %vm127_vm15 = vcmp.eq.s32.totalorder %v123_v36, 1 }
  0x92   :  { %v130_v39 = vsel %vm128_vm14, %v88_v32, %v120_v37  ;;  %v129_v40 = vsel %vm127_vm15, %v88_v32, %v119_v38 }
  0x93   :  { %135 = vrot.lane.b32.xlu0 %v130_v39, %s198_s1  ;;  %133 = vrot.lane.b32.xlu1 %v129_v40, %s198_s1 }
  0x95   :  { %v24_v41 = vpop.permute.xlu1 %23  ;;  %v21_v42 = vpop.permute.xlu0 %20 }
  0x96   :  { %vm26_vm0 = vcmp.eq.s32.totalorder %v24_v41, 1  ;;  %vm25_vm1 = vcmp.eq.s32.totalorder %v21_v42, 1 }
  0x97   :  { %v36_v43 = vsel %vm26_vm0, %v30_v23, %v34_v24  ;;  %v35_v44 = vsel %vm25_vm1, %v30_v23, %v34_v24 }
  0x99   :  { %v43_v45 = vpop.permute.xlu1 %42  ;;  %v46_v46 = vpop.permute.xlu0 %45 }
  0x9a   :  { %vm47_vm2 = vcmp.eq.s32.totalorder %v43_v45, 1  ;;  %vm48_vm3 = vcmp.eq.s32.totalorder %v46_v46, 1 }
  0x9b   :  { %v53_v47 = vsel %vm47_vm2, %v52_v26, %v35_v44  ;;  %v54_v48 = vsel %vm48_vm3, %v52_v26, %v36_v43 }
  0x9d   :  { %v61_v49 = vpop.permute.xlu1 %60  ;;  %v64_v50 = vpop.permute.xlu0 %63 }
  0x9e   :  { %vm65_vm4 = vcmp.eq.s32.totalorder %v61_v49, 1  ;;  %vm66_vm5 = vcmp.eq.s32.totalorder %v64_v50, 1 }
  0x9f   :  { %v71_v51 = vsel %vm65_vm4, %v70_v27, %v53_v47  ;;  %v72_v52 = vsel %vm66_vm5, %v70_v27, %v54_v48 }
  0xa1   :  { %v79_v53 = vpop.permute.xlu1 %78  ;;  %v82_v54 = vpop.permute.xlu0 %81 }
  0xa2   :  { %vm83_vm6 = vcmp.eq.s32.totalorder %v79_v53, 1  ;;  %vm84_vm7 = vcmp.eq.s32.totalorder %v82_v54, 1 }
  0xa3   :  { %v89_v55 = vsel %vm83_vm6, %v88_v32, %v71_v51  ;;  %v90_v56 = vsel %vm84_vm7, %v88_v32, %v72_v52 }
 0x105   :  { %v134_v57 = vpop.permute.xlu1 %133  ;;  %v136_v58 = vpop.permute.xlu0 %135 }
 0x106   :  { %v140_v59 = vsel %vm139_vm8, %v89_v55, %v134_v57  ;;  %v141_v60 = vsel %vm139_vm8, %v90_v56, %v136_v58 }
 0x107   :  { %143 = vst.msk [vmem:[#allocation2] sm:$0xff] %vm142_vm9, %v140_v59  ;;  %144 = vst.msk [vmem:[#allocation2 + $0x8] sm:$0xff] %vm142_vm9, %v141_v60 }
 0x108   :  { %183 = shalt.err (!%p180_p4)
}
 0x109   :  { %s184_s19 = scalar_lea.hbm %s240_s2, 256 }
 0x10a   :  { %p185_p5 = scmp.ne.s32.totalorder %s240_s2, %s184_s19  ;;  %p188_p6 = scmp.lt.u32.totalorder %s184_s19, %s240_s2 }
 0x10c   :  { %p190_p7 = pnand %p188_p6, %p185_p5 }
 0x10e   :  { %193 = shalt.err (!%p190_p7)
}
 0x10f   :  { %s200_s24 = smov 128   ;;  %s201_s25 = smov 8  }
 0x110   :  { %156 = dma.vmem_to_hbm [thread:$0]  %s151_s15, 256, %s240_s2, [#allocation3], %s200_s24, %s200_s24, %s201_s25  }
 0x111   :  { %194 = dma.done.wait [#allocation3], 256  }
 0x112   :  { %195 = vsyncadd [#allocation3], 4294967040 }
 0x113   :  { %160 = vsyncpa [#allocation3], 1 }

</bundles_post_ra>
